<compile_context>
chip_gen: v7x
topology: tpu7x:2x2x1
jax: 0.10.0
libtpu: 0.0.40
codegen_flags: <defaults>
</compile_context>

<pallas_src>
import functools

import jax
import jax.numpy as jnp
from jax.experimental import pallas as pl
from jax.experimental.pallas import tpu as pltpu


def _round_up(x, m):
    return (x + m - 1) // m * m


def _qnetwork_kernel(state_ref, w1_ref, b1_ref, w2_ref, b2_ref,
                     wc_ref, bc_ref, out_ref, *, dv_start, dv_stop):
    """One batch tile: 3 MXU matmuls + ReLU/sigmoid epilogue, one dense store."""
    x = state_ref[...].astype(jnp.bfloat16)                             # (TM, S)

    # fc1 + ReLU
    h1 = jnp.dot(x, w1_ref[...], preferred_element_type=jnp.float32) + b1_ref[...]
    h1 = jnp.maximum(h1, 0.0).astype(jnp.bfloat16)                      # (TM, F1)

    # fc2 + ReLU
    h2 = jnp.dot(h1, w2_ref[...], preferred_element_type=jnp.float32) + b2_ref[...]
    h2 = jnp.maximum(h2, 0.0).astype(jnp.bfloat16)                      # (TM, F2)

    # folded fc3 / fc_action_dv / dv-logit head -> one lane-dense slab
    y = jnp.dot(h2, wc_ref[...], preferred_element_type=jnp.float32) + bc_ref[...]  # (TM, NOUT)

    # Apply sigmoid only on the dv lanes (EUP exp + VPU select; one dense store).
    lane = jax.lax.broadcasted_iota(jnp.int32, y.shape, dimension=1)
    is_dv = (lane >= dv_start) & (lane < dv_stop)
    out_ref[...] = jnp.where(is_dv, jax.nn.sigmoid(y), y)


@jax.jit
def qnetwork_forward(state, params):
    """state: (B, state_size) f32 -> (q_values, value_outs, dv_outs), all f32."""
    w1, b1, w2, b2, w3, b3, w4, b4, dv_mean, dv_std = params
    B, S = state.shape
    F1 = w1.shape[1]
    F2 = w2.shape[1]
    A = w3.shape[1]
    D = w4.shape[1]

    # ---- fold fc_action_dv into fc3 and bake the dv affine into extra columns ----
    mean = dv_mean.reshape(())
    std = dv_std.reshape(())
    w_val = w3 @ w4                    # (F2, D)
    b_val = b3 @ w4 + b4               # (1, D)

    NOUT = _round_up(A + 2 * D, 128)   # lane-dense output slab width
    w_cat = jnp.zeros((F2, NOUT), jnp.float32)
    w_cat = w_cat.at[:, :A].set(w3)
    w_cat = w_cat.at[:, A:A + D].set(w_val)
    w_cat = w_cat.at[:, A + D:A + 2 * D].set(w_val * mean)
    b_cat = jnp.zeros((1, NOUT), jnp.float32)
    b_cat = b_cat.at[:, :A].set(b3)
    b_cat = b_cat.at[:, A:A + D].set(b_val)
    b_cat = b_cat.at[:, A + D:A + 2 * D].set(b_val * mean + std * mean)

    # ---- bf16 MXU weights (accumulation stays f32 inside the kernel) ----
    w1b = w1.astype(jnp.bfloat16)
    w2b = w2.astype(jnp.bfloat16)
    wcb = w_cat.astype(jnp.bfloat16)

    # ---- batch tiling: TM-row tiles, pad batch to a multiple of TM ----
    if B >= 512:
        TM = 512
    elif B >= 256:
        TM = 256
    else:
        TM = 128
    B_pad = _round_up(B, TM)
    x = state
    if B_pad != B:
        x = jnp.pad(x, ((0, B_pad - B), (0, 0)))

    grid = (B_pad // TM,)
    kernel = functools.partial(_qnetwork_kernel, dv_start=A + D, dv_stop=A + 2 * D)

    out = pl.pallas_call(
        kernel,
        out_shape=jax.ShapeDtypeStruct((B_pad, NOUT), jnp.float32),
        grid_spec=pltpu.PrefetchScalarGridSpec(
            num_scalar_prefetch=0,
            grid=grid,
            in_specs=[
                pl.BlockSpec((TM, S), lambda i: (i, 0)),        # state tile (pipelined)
                pl.BlockSpec((S, F1), lambda i: (0, 0)),        # weights: VMEM-resident
                pl.BlockSpec((1, F1), lambda i: (0, 0)),
                pl.BlockSpec((F1, F2), lambda i: (0, 0)),
                pl.BlockSpec((1, F2), lambda i: (0, 0)),
                pl.BlockSpec((F2, NOUT), lambda i: (0, 0)),
                pl.BlockSpec((1, NOUT), lambda i: (0, 0)),
            ],
            out_specs=pl.BlockSpec((TM, NOUT), lambda i: (i, 0)),
        ),
        compiler_params=pltpu.CompilerParams(
            dimension_semantics=("parallel",)),                 # v7x: shard over 2 TCs
    )(x, w1b, b1, w2b, b2, wcb, b_cat)

    q_values = out[:B, :A]
    value_outs = out[:B, A:A + D]
    dv_outs = out[:B, A + D:A + 2 * D]
    return q_values, value_outs, dv_outs


def init_params(key, state_size, action_size, num_dvs=1, fc1_units=128, fc2_units=128):
    """Deterministic synthetic init (PyTorch-Linear-style uniform bounds)."""
    def linear(k, fan_in, fan_out):
        kw, kb = jax.random.split(k)
        bound = 1.0 / jnp.sqrt(jnp.float32(fan_in))
        w = jax.random.uniform(kw, (fan_in, fan_out), jnp.float32, -bound, bound)
        b = jax.random.uniform(kb, (1, fan_out), jnp.float32, -bound, bound)
        return w, b

    k1, k2, k3, k4 = jax.random.split(key, 4)
    w1, b1 = linear(k1, state_size, fc1_units)
    w2, b2 = linear(k2, fc1_units, fc2_units)
    w3, b3 = linear(k3, fc2_units, action_size)
    w4, b4 = linear(k4, action_size, num_dvs)
    # PyTorch inits these to 1.0 / 0.0; use non-trivial values to exercise the path.
    dv_scale_mean = jnp.array([[1.5]], dtype=jnp.float32)
    dv_scale_std = jnp.array([[0.25]], dtype=jnp.float32)
    return (w1, b1, w2, b2, w3, b3, w4, b4, dv_scale_mean, dv_scale_std)


def _reference_forward(state, params):
    """Pure-JAX f32 reference of the PyTorch forward semantics."""
    w1, b1, w2, b2, w3, b3, w4, b4, dv_mean, dv_std = params
    x = jax.nn.relu(state @ w1 + b1)
    x = jax.nn.relu(x @ w2 + b2)
    q = x @ w3 + b3
    val = q @ w4 + b4
    dv = jax.nn.sigmoid((val + dv_std.reshape(())) * dv_mean.reshape(()))
    return q, val, dv


if __name__ == "__main__":
    key = jax.random.PRNGKey(0)
    k_param, k_state = jax.random.split(key)

    batch = 200          # pads to 256 -> grid=(2,) with TM=128 (exercises tiling + padding)
    state_size = 16
    action_size = 4
    num_dvs = 1

    params = init_params(k_param, state_size, action_size, num_dvs)
    state = jax.random.normal(k_state, (batch, state_size), dtype=jnp.float32)

    q_values, value_outs, dv_outs = qnetwork_forward(state, params)
    jax.block_until_ready((q_values, value_outs, dv_outs))

    assert q_values.shape == (batch, action_size)
    assert value_outs.shape == (batch, num_dvs)
    assert dv_outs.shape == (batch, num_dvs)

    # Sanity check vs. pure-JAX f32 reference (kernel uses bf16 operands with f32
    # accumulation, so tolerance is bf16-level rather than 1e-5).
    q_ref, val_ref, dv_ref = _reference_forward(state, params)
    assert jnp.allclose(q_values, q_ref, atol=5e-2, rtol=5e-2), "q_values mismatch"
    assert jnp.allclose(value_outs, val_ref, atol=5e-2, rtol=5e-2), "value_outs mismatch"
    assert jnp.allclose(dv_outs, dv_ref, atol=5e-2, rtol=5e-2), "dv_outs mismatch"

    print("KERNEL_OK")
</pallas_src>

<mosaic_0001>
module attributes {stable_mosaic.version = 11 : i64} {
  func.func @_qnetwork_kernel(%arg0: i32, %arg1: memref<128x16xf32, #tpu.memory_space<vmem>>, %arg2: memref<16x128xbf16, #tpu.memory_space<vmem>>, %arg3: memref<1x128xf32, #tpu.memory_space<vmem>>, %arg4: memref<128x128xbf16, #tpu.memory_space<vmem>>, %arg5: memref<1x128xf32, #tpu.memory_space<vmem>>, %arg6: memref<128x128xbf16, #tpu.memory_space<vmem>>, %arg7: memref<1x128xf32, #tpu.memory_space<vmem>>, %arg8: memref<128x128xf32, #tpu.memory_space<vmem>>) attributes {dimension_semantics = [#tpu.dimension_semantics<parallel>], iteration_bounds = array<i64: 2>, scalar_prefetch = 0 : i64, scratch_operands = 0 : i64, tpu.core_type = #tpu.core_type<tc>, window_params = [{transform_indices = @transform_0, window_bounds = array<i64: 128, 16>}, {pipeline_mode = #tpu.pipeline_mode<synchronous>, transform_indices = @transform_1, window_bounds = array<i64: 16, 128>}, {pipeline_mode = #tpu.pipeline_mode<synchronous>, transform_indices = @transform_2, window_bounds = array<i64: 1, 128>}, {pipeline_mode = #tpu.pipeline_mode<synchronous>, transform_indices = @transform_3, window_bounds = array<i64: 128, 128>}, {pipeline_mode = #tpu.pipeline_mode<synchronous>, transform_indices = @transform_4, window_bounds = array<i64: 1, 128>}, {pipeline_mode = #tpu.pipeline_mode<synchronous>, transform_indices = @transform_5, window_bounds = array<i64: 128, 128>}, {pipeline_mode = #tpu.pipeline_mode<synchronous>, transform_indices = @transform_6, window_bounds = array<i64: 1, 128>}, {transform_indices = @transform_7, window_bounds = array<i64: 128, 128>}]} {
    %c0 = arith.constant 0 : index
    %c0_0 = arith.constant 0 : index
    %0 = vector.load %arg1[%c0, %c0_0] : memref<128x16xf32, #tpu.memory_space<vmem>>, vector<128x16xf32>
    %1 = arith.truncf %0 : vector<128x16xf32> to vector<128x16xbf16>
    %c0_1 = arith.constant 0 : index
    %c0_2 = arith.constant 0 : index
    %2 = vector.load %arg2[%c0_1, %c0_2] : memref<16x128xbf16, #tpu.memory_space<vmem>>, vector<16x128xbf16>
    %cst = arith.constant dense<0.000000e+00> : vector<128x128xf32>
    %3 = tpu.matmul %1, %2, %cst {dimension_numbers = #tpu.dot_dimension_numbers<[1], [0], [0], [1], [0, 0, 1, 1], [], []>} : vector<128x16xbf16>, vector<16x128xbf16>, vector<128x128xf32> -> vector<128x128xf32>
    %c0_3 = arith.constant 0 : index
    %c0_4 = arith.constant 0 : index
    %4 = vector.load %arg3[%c0_3, %c0_4] : memref<1x128xf32, #tpu.memory_space<vmem>>, vector<1x128xf32>
    %5 = vector.broadcast %4 : vector<1x128xf32> to vector<128x128xf32>
    %6 = arith.addf %3, %5 : vector<128x128xf32>
    %cst_5 = arith.constant 0.000000e+00 : f32
    %7 = vector.broadcast %cst_5 : f32 to vector<128x128xf32>
    %8 = arith.maximumf %6, %7 : vector<128x128xf32>
    %9 = arith.truncf %8 : vector<128x128xf32> to vector<128x128xbf16>
    %c0_6 = arith.constant 0 : index
    %c0_7 = arith.constant 0 : index
    %10 = vector.load %arg4[%c0_6, %c0_7] : memref<128x128xbf16, #tpu.memory_space<vmem>>, vector<128x128xbf16>
    %cst_8 = arith.constant dense<0.000000e+00> : vector<128x128xf32>
    %11 = tpu.matmul %9, %10, %cst_8 {dimension_numbers = #tpu.dot_dimension_numbers<[1], [0], [0], [1], [0, 0, 1, 1], [], []>} : vector<128x128xbf16>, vector<128x128xbf16>, vector<128x128xf32> -> vector<128x128xf32>
    %c0_9 = arith.constant 0 : index
    %c0_10 = arith.constant 0 : index
    %12 = vector.load %arg5[%c0_9, %c0_10] : memref<1x128xf32, #tpu.memory_space<vmem>>, vector<1x128xf32>
    %13 = vector.broadcast %12 : vector<1x128xf32> to vector<128x128xf32>
    %14 = arith.addf %11, %13 : vector<128x128xf32>
    %cst_11 = arith.constant 0.000000e+00 : f32
    %15 = vector.broadcast %cst_11 : f32 to vector<128x128xf32>
    %16 = arith.maximumf %14, %15 : vector<128x128xf32>
    %17 = arith.truncf %16 : vector<128x128xf32> to vector<128x128xbf16>
    %c0_12 = arith.constant 0 : index
    %c0_13 = arith.constant 0 : index
    %18 = vector.load %arg6[%c0_12, %c0_13] : memref<128x128xbf16, #tpu.memory_space<vmem>>, vector<128x128xbf16>
    %cst_14 = arith.constant dense<0.000000e+00> : vector<128x128xf32>
    %19 = tpu.matmul %17, %18, %cst_14 {dimension_numbers = #tpu.dot_dimension_numbers<[1], [0], [0], [1], [0, 0, 1, 1], [], []>} : vector<128x128xbf16>, vector<128x128xbf16>, vector<128x128xf32> -> vector<128x128xf32>
    %c0_15 = arith.constant 0 : index
    %c0_16 = arith.constant 0 : index
    %20 = vector.load %arg7[%c0_15, %c0_16] : memref<1x128xf32, #tpu.memory_space<vmem>>, vector<1x128xf32>
    %21 = vector.broadcast %20 : vector<1x128xf32> to vector<128x128xf32>
    %22 = arith.addf %19, %21 : vector<128x128xf32>
    %23 = tpu.iota {dimensions = array<i32: 1>} : vector<128x128xi32>
    %c5_i32 = arith.constant 5 : i32
    %24 = vector.broadcast %c5_i32 : i32 to vector<128x128xi32>
    %25 = arith.cmpi sge, %23, %24 : vector<128x128xi32>
    %c6_i32 = arith.constant 6 : i32
    %26 = vector.broadcast %c6_i32 : i32 to vector<128x128xi32>
    %27 = arith.cmpi slt, %23, %26 : vector<128x128xi32>
    %28 = arith.andi %25, %27 : vector<128x128xi1>
    %29 = arith.negf %22 : vector<128x128xf32>
    %30 = math.exp %29 : vector<128x128xf32>
    %cst_17 = arith.constant 1.000000e+00 : f32
    %31 = vector.broadcast %cst_17 : f32 to vector<128x128xf32>
    %32 = arith.addf %31, %30 : vector<128x128xf32>
    %33 = arith.divf %31, %32 : vector<128x128xf32>
    %34 = arith.select %28, %33, %22 : vector<128x128xi1>, vector<128x128xf32>
    %c0_18 = arith.constant 0 : index
    %c0_19 = arith.constant 0 : index
    %35 = vector.load %arg8[%c0_18, %c0_19] : memref<128x128xf32, #tpu.memory_space<vmem>>, vector<128x128xf32>
    tpu.vector_store %arg8[%c0_18, %c0_19], %34 {strides = array<i32>} : memref<128x128xf32, #tpu.memory_space<vmem>>, vector<128x128xf32>,
    return
  }
  func.func @transform_0(%arg0: i32) -> (i32, i32) {
    %c0_i32 = arith.constant 0 : i32
    %c0_i32_0 = arith.constant 0 : i32
    return %arg0, %c0_i32 : i32, i32
  }
  func.func @transform_1(%arg0: i32) -> (i32, i32) {
    %c0_i32 = arith.constant 0 : i32
    %c0_i32_0 = arith.constant 0 : i32
    %c0_i32_1 = arith.constant 0 : i32
    return %c0_i32, %c0_i32_0 : i32, i32
  }
  func.func @transform_2(%arg0: i32) -> (i32, i32) {
    %c0_i32 = arith.constant 0 : i32
    %c0_i32_0 = arith.constant 0 : i32
    %c0_i32_1 = arith.constant 0 : i32
    return %c0_i32, %c0_i32_0 : i32, i32
  }
  func.func @transform_3(%arg0: i32) -> (i32, i32) {
    %c0_i32 = arith.constant 0 : i32
    %c0_i32_0 = arith.constant 0 : i32
    %c0_i32_1 = arith.constant 0 : i32
    return %c0_i32, %c0_i32_0 : i32, i32
  }
  func.func @transform_4(%arg0: i32) -> (i32, i32) {
    %c0_i32 = arith.constant 0 : i32
    %c0_i32_0 = arith.constant 0 : i32
    %c0_i32_1 = arith.constant 0 : i32
    return %c0_i32, %c0_i32_0 : i32, i32
  }
  func.func @transform_5(%arg0: i32) -> (i32, i32) {
    %c0_i32 = arith.constant 0 : i32
    %c0_i32_0 = arith.constant 0 : i32
    %c0_i32_1 = arith.constant 0 : i32
    return %c0_i32, %c0_i32_0 : i32, i32
  }
  func.func @transform_6(%arg0: i32) -> (i32, i32) {
    %c0_i32 = arith.constant 0 : i32
    %c0_i32_0 = arith.constant 0 : i32
    %c0_i32_1 = arith.constant 0 : i32
    return %c0_i32, %c0_i32_0 : i32, i32
  }
  func.func @transform_7(%arg0: i32) -> (i32, i32) {
    %c0_i32 = arith.constant 0 : i32
    %c0_i32_0 = arith.constant 0 : i32
    return %arg0, %c0_i32 : i32, i32
  }
}

</mosaic_0001>

<bundles_post_ra>
// kernel: qnetwork_forward.1
= control target key start
LH: loop header
LB: loop body
LE: loop exit
PB: predicated region body
PF: predicated region fallthrough
CT: control target
= control target key end

     0   :  { %s1332_s24 = smov 0   ;;  %s1578_s0 = inlined_call_operand.vmem [shape: f32[256,16], index: 0, kind: input, shape index: {}]   ;;  %s1579_s1 = inlined_call_operand.vmem [shape: bf16[16,128], index: 1, kind: input, shape index: {}]   ;;  %s1580_s2 = inlined_call_operand.vmem [shape: f32[1,128], index: 2, kind: input, shape index: {}]   ;;  %s1581_s3 = inlined_call_operand.vmem [shape: bf16[128,128], index: 3, kind: input, shape index: {}]   ;;  %s1582_s4 = inlined_call_operand.vmem [shape: f32[1,128], index: 4, kind: input, shape index: {}]   ;;  %s1583_s5 = inlined_call_operand.vmem [shape: bf16[128,128], index: 5, kind: input, shape index: {}]   ;;  %s1584_s6 = inlined_call_operand.vmem [shape: f32[1,128], index: 6, kind: input, shape index: {}]   ;;  %s1585_s7 = inlined_call_operand.vmem [shape: f32[256,128], index: 7, kind: output, shape index: {}]  }
   0x1 LB: > { %s1017_s25 = sadd.s32 4294967295, %s1290_s24   ;;  %p1021_p0 = scmp.ge.s32.totalorder %s1290_s24, 1  ;;  %s1290_s24 = sphi %s1332_s24, %s17_s24  }
   0x2   : > { %p238_p1 = scmp.lt.s32.totalorder %s1290_s24, 3 }
   0x4   : > { %p239_p2 = pnand %p1021_p0, %p238_p1 }
   0x5   : > { %v1203_v0 = vld [vmem:[%s1579_s1] sm:$0xff] (!%p239_p2)   ;;  %s1022_s28 = sshll.u32 (!%p239_p2), %s1017_s25, 4  ;;  %v1205_v2 = vld [vmem:[%s1581_s3 + $0x8] sm:$0xff] (!%p239_p2)   ;;  %v1206_v3 = vld [vmem:[%s1581_s3 + $0x10] sm:$0xff] (!%p239_p2)   ;;  %vm322_vm0 = vcmask (!%p239_p2), 130048  }
   0x6   : > { %242 = sbr.rel (%p239_p2) target bundleno = 734 (0x2de), region = 48  ;;  %p271_p3 = scmp.lt.s32.totalorder (!%p239_p2), %s1022_s28, 31  ;;  %1113 = vmatprep.subr.bf16.mxu0 (!%p239_p2), %v1203_v0  ;;  %v1204_v1 = vld [vmem:[%s1581_s3] sm:$0xff] (!%p239_p2)   ;;  %v1207_v13 = vld [vmem:[%s1581_s3 + $0x18] sm:$0xff] (!%p239_p2)   ;;  %v1209_v21 = vld [vmem:[%s1581_s3 + $0x28] sm:$0xff] (!%p239_p2)  }
   0x7   : > { %1114 = vmatpush3.bf16.msra.mxu0 (!%p239_p2), %v1203_v0  ;;  %1131 = vmatprep.subr.bf16.mxu1 (!%p239_p2), %v1204_v1  ;;  %v1208_v18 = vld [vmem:[%s1581_s3 + $0x20] sm:$0xff] (!%p239_p2)   ;;  %v1210_v31 = vld [vmem:[%s1581_s3 + $0x30] sm:$0xff] (!%p239_p2)   ;;  %v1211_v32 = vld [vmem:[%s1581_s3 + $0x38] sm:$0xff] (!%p239_p2)  }
   0x8   : > { %1132 = vmatpush3.bf16.msra.mxu1 (!%p239_p2), %v1204_v1  ;;  %v1212_v33 = vld [vmem:[%s1583_s5] sm:$0xff] (!%p239_p2)   ;;  %v1213_v34 = vld [vmem:[%s1583_s5 + $0x8] sm:$0xff] (!%p239_p2)   ;;  %v1214_v35 = vld [vmem:[%s1583_s5 + $0x10] sm:$0xff] (!%p239_p2)  }
   0x9   : > { %1133 = vmatprep.subr.bf16.mxu1 (!%p239_p2), %v1205_v2  ;;  %1163 = vmatprep.subr.bf16.mxu0 (!%p239_p2), %v1212_v33  ;;  %v1215_v36 = vld [vmem:[%s1583_s5 + $0x18] sm:$0xff] (!%p239_p2)   ;;  %v1216_v37 = vld [vmem:[%s1583_s5 + $0x20] sm:$0xff] (!%p239_p2)   ;;  %v1217_v38 = vld [vmem:[%s1583_s5 + $0x28] sm:$0xff] (!%p239_p2)  }
   0xa   : > { %v1026_v39 = vld [vmem:[%s1580_s2] ss:$0 sm:$0xff] (!%p239_p2) }
   0xc   : > { %1134 = vmatpush3.bf16.msra.mxu1 (!%p239_p2), %v1205_v2 }
   0xd   : > { %s1589_s28 = smov (!%p271_p3, %s1022_s28), 31  ;;  %1135 = vmatprep.subr.bf16.mxu1 %v1206_v3 }
   0xe   : > { %s1023_s10 = sshll.u32 %s1589_s28, 3 }
   0xf   : > { %s1357_s13 = scalar_lea.vmem %s1578_s0, %s1023_s10  ;;  %s1499_s9 = scalar_lea.vmem %s1585_s7, %s1023_s10 }
  0x10   : > { %v283_v4 = vld [vmem:[%s1357_s13] sm:$0xff]  ;;  %v284_v5 = vld [vmem:[%s1357_s13 + $0x8] sm:$0xff]  ;;  %v285_v6 = vld [vmem:[%s1357_s13 + $0x10] sm:$0xff]  ;;  %1136 = vmatpush3.bf16.msra.mxu1 %v1206_v3 }
  0x11   : > { %v299_v7 = vpack.c.bf16 %v284_v5, %v283_v4  ;;  %v286_v8 = vld [vmem:[%s1357_s13 + $0x18] sm:$0xff]  ;;  %v287_v9 = vld [vmem:[%s1357_s13 + $0x20] sm:$0xff]  ;;  %v288_v10 = vld [vmem:[%s1357_s13 + $0x28] sm:$0xff]  ;;  %1137 = vmatprep.subr.bf16.mxu1 %v1207_v13 }
  0x12   : > { %v300_v11 = vpack.c.bf16 %v286_v8, %v285_v6  ;;  %v301_v12 = vpack.c.bf16 %v288_v10, %v287_v9  ;;  %v289_v14 = vld [vmem:[%s1357_s13 + $0x30] sm:$0xff]  ;;  %v290_v15 = vld [vmem:[%s1357_s13 + $0x38] sm:$0xff]  ;;  %v291_v16 = vld [vmem:[%s1357_s13 + $0x40] sm:$0xff] }
  0x13   : > { %1115 = vmatprep.mubr.msk.bf16.mxu0 %vm322_vm0, %v299_v7  ;;  %v292_v17 = vld [vmem:[%s1357_s13 + $0x48] sm:$0xff]  ;;  %v302_v19 = vpack.c.bf16 %v290_v15, %v289_v14  ;;  %v293_v22 = vld [vmem:[%s1357_s13 + $0x50] sm:$0xff]  ;;  %v294_v23 = vld [vmem:[%s1357_s13 + $0x58] sm:$0xff] }
  0x14   : > { %1116 = vmatmul.mubr.msk.bf16.vlgmr.msra.gmra.mrb[0].mxu0 %vm322_vm0, %v300_v11  ;;  %v303_v20 = vpack.c.bf16 %v292_v17, %v291_v16  ;;  %1138 = vmatpush3.bf16.msra.mxu1 %v1207_v13  ;;  %v295_v24 = vld [vmem:[%s1357_s13 + $0x60] sm:$0xff]  ;;  %v296_v25 = vld [vmem:[%s1357_s13 + $0x68] sm:$0xff]  ;;  %v304_v26 = vpack.c.bf16 %v294_v23, %v293_v22  ;;  %v297_v28 = vld [vmem:[%s1357_s13 + $0x70] sm:$0xff] }
  0x15   : > { %1119 = vmatprep.mubr.msk.bf16.mxu0 %vm322_vm0, %v301_v12  ;;  %1139 = vmatprep.subr.bf16.mxu1 %v1208_v18  ;;  %v305_v27 = vpack.c.bf16 %v296_v25, %v295_v24  ;;  %v298_v29 = vld [vmem:[%s1357_s13 + $0x78] sm:$0xff] }
  0x16   : > { %v306_v30 = vpack.c.bf16 %v298_v29, %v297_v28  ;;  %1164 = vmatpush3.bf16.msra.mxu0 %v1212_v33  ;;  %v1219_v33 = vld [vmem:[%s1583_s5 + $0x38] sm:$0xff]  }
  0x17   : > { %1165 = vmatprep.subr.bf16.mxu0 %v1213_v34 }
  0x18   : > { %1140 = vmatpush3.bf16.msra.mxu1 %v1208_v18 }
  0x19   : > { %1141 = vmatprep.subr.bf16.mxu1 %v1209_v21 }
  0x1a   : > { %1166 = vmatpush3.bf16.msra.mxu0 %v1213_v34  ;;  %v1036_v34 = vld [vmem:[%s1582_s4] ss:$0 sm:$0xff] }
  0x1b   : > { %1167 = vmatprep.subr.bf16.mxu0 %v1214_v35 }
  0x1c   : > { %1120 = vmatmul.mubr.msk.bf16.gmra.mrb[4].mxu0 %vm322_vm0, %v302_v19  ;;  %1142 = vmatpush3.bf16.msra.mxu1 %v1209_v21 }
  0x1d   : > { %1123 = vmatprep.mubr.msk.bf16.mxu0 %vm322_vm0, %v303_v20  ;;  %1143 = vmatprep.subr.bf16.mxu1 %v1210_v31 }
  0x1e   : > { %1168 = vmatpush3.bf16.msra.mxu0 %v1214_v35 }
  0x1f   : > { %1169 = vmatprep.subr.bf16.mxu0 %v1215_v36 }
  0x20   : > { %1144 = vmatpush3.bf16.msra.mxu1 %v1210_v31 }
  0x21   : > { %1145 = vmatprep.subr.bf16.mxu1 %v1211_v32 }
  0x22   : > { %1170 = vmatpush3.bf16.msra.mxu0 %v1215_v36 }
  0x23   : > { %1171 = vmatprep.subr.bf16.mxu0 %v1216_v37 }
  0x24   : > { %1124 = vmatmul.mubr.msk.bf16.gmra.mrb[8].mxu0 %vm322_vm0, %v304_v26  ;;  %1146 = vmatpush3.bf16.msra.mxu1 %v1211_v32  ;;  %v1218_v32 = vld [vmem:[%s1583_s5 + $0x30] sm:$0xff]  }
  0x25   : > { %1127 = vmatprep.mubr.msk.bf16.mxu0 %vm322_vm0, %v305_v27 }
  0x26   : > { %1172 = vmatpush3.bf16.msra.mxu0 %v1216_v37 }
  0x27   : > { %1173 = vmatprep.subr.bf16.mxu0 %v1217_v38 }
  0x2a   : > { %1174 = vmatpush3.bf16.msra.mxu0 %v1217_v38 }
  0x2b   : > { %1175 = vmatprep.subr.bf16.mxu0 %v1218_v32 }
  0x2c   : > { %1128 = vmatmul.mubr.msk.bf16.gmra.mrb[12].mxu0 %vm322_vm0, %v306_v30 }
  0x2e   : > { %1176 = vmatpush3.bf16.msra.mxu0 %v1218_v32 }
  0x2f   : > { %1177 = vmatprep.subr.bf16.mxu0 %v1219_v33 }
  0x32   : > { %1178 = vmatpush3.bf16.msra.mxu0 %v1219_v33 }
  0xe7   : > { %v1117_v40 = vpop.f32.mrb[0].mxu0 }
  0xe8   : > { %v390_v41 = vadd.f32 %v1117_v40, %v1026_v39  ;;  %v381_v42 = vpop.f32.mrb[1].mxu0 }
  0xe9   : > { %v382_v43 = vadd.f32 %v1026_v39, %v381_v42  ;;  %v1118_v44 = vpop.f32.mrb[2].mxu0 }
  0xea   : > { %v393_v45 = vadd.f32 %v1118_v44, %v1026_v39  ;;  %v384_v46 = vpop.f32.mrb[3].mxu0  ;;  %v446_v48 = vmax.f32 %v390_v41, 0.0 }
  0xeb   : > { %v385_v47 = vadd.f32 %v1026_v39, %v384_v46  ;;  %v444_v50 = vmax.f32 %v382_v43, 0.0 }
  0xec   : > { %v447_v49 = vmax.f32 %v393_v45, 0.0 }
  0xed   : > { %v445_v51 = vmax.f32 %v385_v47, 0.0 }
  0xee   : > { %v461_v52 = vpack.c.bf16 %v447_v49, %v446_v48 }
  0xef   : > { %v1121_v53 = vpop.f32.mrb[4].mxu0  ;;  %v460_v54 = vpack.c.bf16 %v445_v51, %v444_v50 }
  0xf0   : > { %v406_v55 = vadd.f32 %v1121_v53, %v1026_v39  ;;  %v397_v56 = vpop.f32.mrb[5].mxu0 }
  0xf1   : > { %v398_v57 = vadd.f32 %v1026_v39, %v397_v56  ;;  %v1122_v58 = vpop.f32.mrb[6].mxu0  ;;  %1147 = vmatprep.mubr.bf16.mxu1 %v460_v54 }
  0xf2   : > { %v409_v59 = vadd.f32 %v1122_v58, %v1026_v39  ;;  %v400_v60 = vpop.f32.mrb[7].mxu0  ;;  %1148 = vmatmul.mubr.bf16.vlgmr.msra.gmra.mrb[0].mxu1 %v461_v52  ;;  %v450_v62 = vmax.f32 %v406_v55, 0.0 }
  0xf3   : > { %v401_v61 = vadd.f32 %v1026_v39, %v400_v60  ;;  %v448_v0 = vmax.f32 %v398_v57, 0.0 }
  0xf4   : > { %v451_v63 = vmax.f32 %v409_v59, 0.0 }
  0xf5   : > { %v449_v1 = vmax.f32 %v401_v61, 0.0 }
  0xf6   : > { %v463_v2 = vpack.c.bf16 %v451_v63, %v450_v62 }
  0xf7   : > { %v462_v3 = vpack.c.bf16 %v449_v1, %v448_v0  ;;  %v1125_v4 = vpop.f32.mrb[8].mxu0 }
  0xf8   : > { %v422_v5 = vadd.f32 %v1125_v4, %v1026_v39  ;;  %v413_v6 = vpop.f32.mrb[9].mxu0 }
  0xf9   : > { %v414_v7 = vadd.f32 %v1026_v39, %v413_v6  ;;  %v1126_v8 = vpop.f32.mrb[10].mxu0  ;;  %1151 = vmatprep.mubr.bf16.mxu1 %v462_v3 }
  0xfa   : > { %v425_v9 = vadd.f32 %v1126_v8, %v1026_v39  ;;  %v416_v10 = vpop.f32.mrb[11].mxu0  ;;  %1152 = vmatmul.mubr.bf16.gmra.mrb[4].mxu1 %v463_v2  ;;  %v454_v12 = vmax.f32 %v422_v5, 0.0 }
  0xfb   : > { %v417_v11 = vadd.f32 %v1026_v39, %v416_v10  ;;  %v452_v14 = vmax.f32 %v414_v7, 0.0 }
  0xfc   : > { %v455_v13 = vmax.f32 %v425_v9, 0.0 }
  0xfd   : > { %v453_v15 = vmax.f32 %v417_v11, 0.0 }
  0xfe   : > { %v465_v16 = vpack.c.bf16 %v455_v13, %v454_v12 }
  0xff   : > { %v464_v17 = vpack.c.bf16 %v453_v15, %v452_v14  ;;  %v1129_v18 = vpop.f32.mrb[12].mxu0 }
 0x100   : > { %v438_v19 = vadd.f32 %v1129_v18, %v1026_v39  ;;  %v429_v20 = vpop.f32.mrb[13].mxu0 }
 0x101   : > { %v430_v21 = vadd.f32 %v1026_v39, %v429_v20  ;;  %v1130_v22 = vpop.f32.mrb[14].mxu0  ;;  %1155 = vmatprep.mubr.bf16.mxu1 %v464_v17 }
 0x102   : > { %v441_v23 = vadd.f32 %v1130_v22, %v1026_v39  ;;  %v432_v24 = vpop.f32.mrb[15].mxu0  ;;  %1156 = vmatmul.mubr.bf16.gmra.mrb[8].mxu1 %v465_v16  ;;  %v458_v26 = vmax.f32 %v438_v19, 0.0 }
 0x103   : > { %v433_v25 = vadd.f32 %v1026_v39, %v432_v24  ;;  %v456_v28 = vmax.f32 %v430_v21, 0.0 }
 0x104   : > { %v459_v27 = vmax.f32 %v441_v23, 0.0 }
 0x105   : > { %v457_v29 = vmax.f32 %v433_v25, 0.0 }
 0x106   : > { %v467_v30 = vpack.c.bf16 %v459_v27, %v458_v26  ;;  %v1434_v27 = vld [vmem:[%s1584_s6] ss:$0 sm:$0xff] }
 0x107   : > { %v466_v31 = vpack.c.bf16 %v457_v29, %v456_v28 }
 0x109   : > { %1159 = vmatprep.mubr.bf16.mxu1 %v466_v31 }
 0x10a   : > { %1160 = vmatmul.mubr.bf16.gmra.mrb[12].mxu1 %v467_v30 }
 0x1c5   : > { %v1149_v35 = vpop.f32.mrb[0].mxu1 }
 0x1c6   : > { %v582_v36 = vadd.f32 %v1149_v35, %v1036_v34  ;;  %v573_v37 = vpop.f32.mrb[1].mxu1 }
 0x1c7   : > { %v574_v38 = vadd.f32 %v1036_v34, %v573_v37  ;;  %v1150_v39 = vpop.f32.mrb[2].mxu1 }
 0x1c8   : > { %v585_v40 = vadd.f32 %v1150_v39, %v1036_v34  ;;  %v576_v41 = vpop.f32.mrb[3].mxu1  ;;  %v638_v43 = vmax.f32 %v582_v36, 0.0 }
 0x1c9   : > { %v577_v42 = vadd.f32 %v1036_v34, %v576_v41  ;;  %v636_v45 = vmax.f32 %v574_v38, 0.0 }
 0x1ca   : > { %v639_v44 = vmax.f32 %v585_v40, 0.0 }
 0x1cb   : > { %v637_v46 = vmax.f32 %v577_v42, 0.0 }
 0x1cc   : > { %v653_v47 = vpack.c.bf16 %v639_v44, %v638_v43 }
 0x1cd   : > { %v652_v48 = vpack.c.bf16 %v637_v46, %v636_v45  ;;  %v1153_v49 = vpop.f32.mrb[4].mxu1 }
 0x1ce   : > { %v598_v50 = vadd.f32 %v1153_v49, %v1036_v34  ;;  %v589_v51 = vpop.f32.mrb[5].mxu1 }
 0x1cf   : > { %v590_v52 = vadd.f32 %v1036_v34, %v589_v51  ;;  %v1154_v53 = vpop.f32.mrb[6].mxu1  ;;  %1179 = vmatprep.mubr.bf16.mxu0 %v652_v48  ;;  %v828_v51 = vlaneseq }
 0x1d0   : > { %v601_v54 = vadd.f32 %v1154_v53, %v1036_v34  ;;  %v592_v55 = vpop.f32.mrb[7].mxu1  ;;  %1180 = vmatmul.mubr.bf16.vlgmr.msra.gmra.mrb[16].mxu0 %v653_v47  ;;  %v642_v57 = vmax.f32 %v598_v50, 0.0 }
 0x1d1   : > { %v593_v56 = vadd.f32 %v1036_v34, %v592_v55  ;;  %v640_v59 = vmax.f32 %v590_v52, 0.0 }
 0x1d2   : > { %v643_v58 = vmax.f32 %v601_v54, 0.0 }
 0x1d3   : > { %v641_v60 = vmax.f32 %v593_v56, 0.0 }
 0x1d4   : > { %v655_v61 = vpack.c.bf16 %v643_v58, %v642_v57 }
 0x1d5   : > { %v654_v62 = vpack.c.bf16 %v641_v60, %v640_v59  ;;  %v1157_v63 = vpop.f32.mrb[8].mxu1 }
 0x1d6   : > { %v614_v0 = vadd.f32 %v1157_v63, %v1036_v34  ;;  %v605_v1 = vpop.f32.mrb[9].mxu1 }
 0x1d7   : > { %v606_v2 = vadd.f32 %v1036_v34, %v605_v1  ;;  %v1158_v3 = vpop.f32.mrb[10].mxu1  ;;  %1183 = vmatprep.mubr.bf16.mxu0 %v654_v62  ;;  %v829_v62 = vand.u32 127, %v828_v51 }
 0x1d8   : > { %v617_v4 = vadd.f32 %v1158_v3, %v1036_v34  ;;  %v608_v5 = vpop.f32.mrb[11].mxu1  ;;  %1184 = vmatmul.mubr.bf16.gmra.mrb[20].mxu0 %v655_v61  ;;  %v646_v7 = vmax.f32 %v614_v0, 0.0 }
 0x1d9   : > { %v609_v6 = vadd.f32 %v1036_v34, %v608_v5  ;;  %v644_v9 = vmax.f32 %v606_v2, 0.0  ;;  %vm830_vm1 = vcmp.ge.s32.totalorder %v829_v62, 5  ;;  %vm831_vm2 = vcmp.lt.s32.totalorder %v829_v62, 6 }
 0x1da   : > { %v647_v8 = vmax.f32 %v617_v4, 0.0  ;;  %vm1487_vm3 = vmand %vm830_vm1, %vm831_vm2 }
 0x1db   : > { %v645_v10 = vmax.f32 %v609_v6, 0.0 }
 0x1dc   : > { %v657_v11 = vpack.c.bf16 %v647_v8, %v646_v7 }
 0x1dd   : > { %v656_v12 = vpack.c.bf16 %v645_v10, %v644_v9  ;;  %v1161_v13 = vpop.f32.mrb[12].mxu1 }
 0x1de   : > { %v630_v14 = vadd.f32 %v1161_v13, %v1036_v34  ;;  %v621_v15 = vpop.f32.mrb[13].mxu1 }
 0x1df   : > { %v622_v16 = vadd.f32 %v1036_v34, %v621_v15  ;;  %v1162_v17 = vpop.f32.mrb[14].mxu1  ;;  %1187 = vmatprep.mubr.bf16.mxu0 %v656_v12 }
 0x1e0   : > { %v633_v18 = vadd.f32 %v1162_v17, %v1036_v34  ;;  %v624_v19 = vpop.f32.mrb[15].mxu1  ;;  %1188 = vmatmul.mubr.bf16.gmra.mrb[24].mxu0 %v657_v11  ;;  %v650_v21 = vmax.f32 %v630_v14, 0.0 }
 0x1e1   : > { %v625_v20 = vadd.f32 %v1036_v34, %v624_v19  ;;  %v648_v23 = vmax.f32 %v622_v16, 0.0 }
 0x1e2   : > { %v651_v22 = vmax.f32 %v633_v18, 0.0 }
 0x1e3   : > { %v649_v24 = vmax.f32 %v625_v20, 0.0 }
 0x1e4   : > { %v659_v25 = vpack.c.bf16 %v651_v22, %v650_v21 }
 0x1e5   : > { %v658_v26 = vpack.c.bf16 %v649_v24, %v648_v23 }
 0x1e7   : > { %1191 = vmatprep.mubr.bf16.mxu0 %v658_v26 }
 0x1e8   : > { %1192 = vmatmul.mubr.bf16.gmra.mrb[28].mxu0 %v659_v25 }
 0x2a3   : > { %v1181_v28 = vpop.f32.mrb[16].mxu0 }
 0x2a4   : > { %v1437_v29 = vadd.f32 %v1181_v28, %v1434_v27  ;;  %v765_v30 = vpop.f32.mrb[17].mxu0 }
 0x2a5   : > { %v1440_v31 = vadd.f32 %v1434_v27, %v765_v30  ;;  %v1182_v32 = vpop.f32.mrb[18].mxu0 }
 0x2a6   : > { %v1056_v33 = vmul.f32 -1.442695, %v1437_v29  ;;  %v1444_v34 = vadd.f32 %v1182_v32, %v1434_v27  ;;  %v768_v35 = vpop.f32.mrb[19].mxu0 }
 0x2a7   : > { %v1054_v36 = vmul.f32 -1.442695, %v1440_v31  ;;  %v1448_v37 = vadd.f32 %v1434_v27, %v768_v35 }
 0x2a8   : > { %1220 = vpow2.f32 %v1056_v33  ;;  %v1057_v38 = vmul.f32 -1.442695, %v1444_v34 }
 0x2a9   : > { %1222 = vpow2.f32 %v1054_v36  ;;  %v1055_v39 = vmul.f32 -1.442695, %v1448_v37 }
 0x2aa   : > { %1224 = vpow2.f32 %v1057_v38 }
 0x2ab   : > { %1226 = vpow2.f32 %v1055_v39  ;;  %v1185_v40 = vpop.f32.mrb[20].mxu0 }
 0x2ac   : > { %v1453_v41 = vadd.f32 %v1185_v40, %v1434_v27  ;;  %v781_v42 = vpop.f32.mrb[21].mxu0 }
 0x2ad   : > { %v1456_v43 = vadd.f32 %v1434_v27, %v781_v42  ;;  %v1186_v44 = vpop.f32.mrb[22].mxu0 }
 0x2ae   : > { %v1060_v45 = vmul.f32 -1.442695, %v1453_v41  ;;  %v1460_v46 = vadd.f32 %v1186_v44, %v1434_v27  ;;  %v784_v47 = vpop.f32.mrb[23].mxu0 }
 0x2af   : > { %v1058_v48 = vmul.f32 -1.442695, %v1456_v43  ;;  %v1464_v49 = vadd.f32 %v1434_v27, %v784_v47 }
 0x2b0   : > { %1228 = vpow2.f32 %v1060_v45  ;;  %v1061_v50 = vmul.f32 -1.442695, %v1460_v46 }
 0x2b1   : > { %1230 = vpow2.f32 %v1058_v48  ;;  %v1059_v52 = vmul.f32 -1.442695, %v1464_v49 }
 0x2b2   : > { %v1221_v53 = vpop.eup %1220  ;;  %1232 = vpow2.f32 %v1061_v50 }
 0x2b3   : > { %v1223_v54 = vpop.eup %1222  ;;  %v883_v55 = vadd.f32 1.0, %v1221_v53  ;;  %1234 = vpow2.f32 %v1059_v52  ;;  %v1189_v56 = vpop.f32.mrb[24].mxu0 }
 0x2b4   : > { %v1225_v57 = vpop.eup %1224  ;;  %v881_v58 = vadd.f32 1.0, %v1223_v54  ;;  %v1469_v59 = vadd.f32 %v1189_v56, %v1434_v27  ;;  %v797_v60 = vpop.f32.mrb[25].mxu0 }
 0x2b5   : > { %v1227_v61 = vpop.eup %1226  ;;  %1236 = vrcp.f32 %v883_v55  ;;  %v884_v63 = vadd.f32 1.0, %v1225_v57  ;;  %v1472_v0 = vadd.f32 %v1434_v27, %v797_v60  ;;  %v1190_v1 = vpop.f32.mrb[26].mxu0 }
 0x2b6   : > { %1238 = vrcp.f32 %v881_v58  ;;  %v882_v2 = vadd.f32 1.0, %v1227_v61  ;;  %v1064_v3 = vmul.f32 -1.442695, %v1469_v59  ;;  %v1476_v4 = vadd.f32 %v1190_v1, %v1434_v27  ;;  %v800_v5 = vpop.f32.mrb[27].mxu0 }
 0x2b7   : > { %1240 = vrcp.f32 %v884_v63  ;;  %v1062_v6 = vmul.f32 -1.442695, %v1472_v0  ;;  %v1480_v7 = vadd.f32 %v1434_v27, %v800_v5 }
 0x2b8   : > { %1242 = vrcp.f32 %v882_v2  ;;  %v1065_v8 = vmul.f32 -1.442695, %v1476_v4 }
 0x2b9   : > { %1244 = vpow2.f32 %v1064_v3  ;;  %v1063_v9 = vmul.f32 -1.442695, %v1480_v7 }
 0x2ba   : > { %v1229_v10 = vpop.eup %1228  ;;  %1246 = vpow2.f32 %v1062_v6 }
 0x2bb   : > { %v1231_v11 = vpop.eup %1230  ;;  %v887_v12 = vadd.f32 1.0, %v1229_v10  ;;  %1248 = vpow2.f32 %v1065_v8  ;;  %v1193_v13 = vpop.f32.mrb[28].mxu0 }
 0x2bc   : > { %v1233_v14 = vpop.eup %1232  ;;  %v885_v15 = vadd.f32 1.0, %v1231_v11  ;;  %1250 = vpow2.f32 %v1063_v9  ;;  %v1485_v16 = vadd.f32 %v1193_v13, %v1434_v27  ;;  %v813_v17 = vpop.f32.mrb[29].mxu0 }
 0x2bd   : > { %v1235_v18 = vpop.eup %1234  ;;  %1252 = vrcp.f32 %v887_v12  ;;  %v888_v20 = vadd.f32 1.0, %v1233_v14  ;;  %v1492_v21 = vadd.f32 %v1434_v27, %v813_v17  ;;  %v1194_v22 = vpop.f32.mrb[30].mxu0 }
 0x2be   : > { %1254 = vrcp.f32 %v885_v15  ;;  %v886_v23 = vadd.f32 1.0, %v1235_v18  ;;  %v1068_v24 = vmul.f32 -1.442695, %v1485_v16  ;;  %v1503_v25 = vadd.f32 %v1194_v22, %v1434_v27  ;;  %v816_v26 = vpop.f32.mrb[31].mxu0 }
 0x2bf   : > { %v1237_v28 = vpop.eup %1236  ;;  %1256 = vrcp.f32 %v888_v20  ;;  %v1066_v30 = vmul.f32 -1.442695, %v1492_v21  ;;  %v1507_v32 = vadd.f32 %v1434_v27, %v816_v26 }
 0x2c0   : > { %v1239_v33 = vpop.eup %1238  ;;  %v931_v35 = vsel %vm1487_vm3, %v1237_v28, %v1437_v29  ;;  %1258 = vrcp.f32 %v886_v23  ;;  %v1069_v36 = vmul.f32 -1.442695, %v1503_v25 }
 0x2c1   : > { %v1241_v38 = vpop.eup %1240  ;;  %947 = vst [vmem:[%s1499_s9 + $0x10] sm:$0xff] %v931_v35  ;;  %v929_v39 = vsel %vm1487_vm3, %v1239_v33, %v1440_v31  ;;  %1260 = vpow2.f32 %v1068_v24  ;;  %v1067_v40 = vmul.f32 -1.442695, %v1507_v32 }
 0x2c2   : > { %v1243_v27 = vpop.eup %1242  ;;  %945 = vst [vmem:[%s1499_s9] sm:$0xff] %v929_v39  ;;  %v932_v42 = vsel %vm1487_vm3, %v1241_v38, %v1444_v34  ;;  %1262 = vpow2.f32 %v1066_v30 }
 0x2c3   : > { %v1245_v29 = vpop.eup %1244  ;;  %948 = vst [vmem:[%s1499_s9 + $0x18] sm:$0xff] %v932_v42  ;;  %v930_v44 = vsel %vm1487_vm3, %v1243_v27, %v1448_v37  ;;  %1264 = vpow2.f32 %v1069_v36 }
 0x2c4   : > { %v1247_v45 = vpop.eup %1246  ;;  %946 = vst [vmem:[%s1499_s9 + $0x8] sm:$0xff] %v930_v44  ;;  %v891_v31 = vadd.f32 1.0, %v1245_v29  ;;  %1266 = vpow2.f32 %v1067_v40 }
 0x2c5   : > { %v1249_v47 = vpop.eup %1248  ;;  %v889_v48 = vadd.f32 1.0, %v1247_v45 }
 0x2c6   : > { %v1251_v50 = vpop.eup %1250  ;;  %1268 = vrcp.f32 %v891_v31  ;;  %v892_v34 = vadd.f32 1.0, %v1249_v47 }
 0x2c7   : > { %v1253_v51 = vpop.eup %1252  ;;  %1270 = vrcp.f32 %v889_v48  ;;  %v890_v52 = vadd.f32 1.0, %v1251_v50 }
 0x2c8   : > { %v1255_v53 = vpop.eup %1254  ;;  %v935_v37 = vsel %vm1487_vm3, %v1253_v51, %v1453_v41  ;;  %1272 = vrcp.f32 %v892_v34 }
 0x2c9   : > { %v1257_v54 = vpop.eup %1256  ;;  %951 = vst [vmem:[%s1499_s9 + $0x30] sm:$0xff] %v935_v37  ;;  %v933_v55 = vsel %vm1487_vm3, %v1255_v53, %v1456_v43  ;;  %1274 = vrcp.f32 %v890_v52 }
 0x2ca   : > { %v1259_v56 = vpop.eup %1258  ;;  %949 = vst [vmem:[%s1499_s9 + $0x20] sm:$0xff] %v933_v55  ;;  %v936_v57 = vsel %vm1487_vm3, %v1257_v54, %v1460_v46 }
 0x2cb   : > { %v1261_v58 = vpop.eup %1260  ;;  %952 = vst [vmem:[%s1499_s9 + $0x38] sm:$0xff] %v936_v57  ;;  %v934_v41 = vsel %vm1487_vm3, %v1259_v56, %v1464_v49 }
 0x2cc   : > { %v1263_v60 = vpop.eup %1262  ;;  %950 = vst [vmem:[%s1499_s9 + $0x28] sm:$0xff] %v934_v41  ;;  %v895_v61 = vadd.f32 1.0, %v1261_v58 }
 0x2cd   : > { %v1265_v62 = vpop.eup %1264  ;;  %v893_v43 = vadd.f32 1.0, %v1263_v60 }
 0x2ce   : > { %v1267_v63 = vpop.eup %1266  ;;  %1276 = vrcp.f32 %v895_v61  ;;  %v896_v1 = vadd.f32 1.0, %v1265_v62 }
 0x2cf   : > { %1278 = vrcp.f32 %v893_v43  ;;  %v894_v46 = vadd.f32 1.0, %v1267_v63 }
 0x2d0   : > { %v1269_v2 = vpop.eup %1268  ;;  %1280 = vrcp.f32 %v896_v1 }
 0x2d1   : > { %v1271_v3 = vpop.eup %1270  ;;  %v939_v49 = vsel %vm1487_vm3, %v1269_v2, %v1469_v59  ;;  %1282 = vrcp.f32 %v894_v46 }
 0x2d2   : > { %v1273_v5 = vpop.eup %1272  ;;  %955 = vst [vmem:[%s1499_s9 + $0x50] sm:$0xff] %v939_v49  ;;  %v937_v6 = vsel %vm1487_vm3, %v1271_v3, %v1472_v0 }
 0x2d3   : > { %v1275_v8 = vpop.eup %1274  ;;  %953 = vst [vmem:[%s1499_s9 + $0x40] sm:$0xff] %v937_v6  ;;  %v940_v9 = vsel %vm1487_vm3, %v1273_v5, %v1476_v4 }
 0x2d4   : > { %956 = vst [vmem:[%s1499_s9 + $0x58] sm:$0xff] %v940_v9  ;;  %v938_v59 = vsel %vm1487_vm3, %v1275_v8, %v1480_v7 }
 0x2d5   : > { %954 = vst [vmem:[%s1499_s9 + $0x48] sm:$0xff] %v938_v59 }
 0x2d8   : > { %v1277_v10 = vpop.eup %1276 }
 0x2d9   : > { %v1279_v11 = vpop.eup %1278  ;;  %v943_v0 = vsel %vm1487_vm3, %v1277_v10, %v1485_v16 }
 0x2da   : > { %v1281_v12 = vpop.eup %1280  ;;  %959 = vst [vmem:[%s1499_s9 + $0x70] sm:$0xff] %v943_v0  ;;  %v941_v13 = vsel %vm1487_vm3, %v1279_v11, %v1492_v21 }
 0x2db   : > { %v1283_v14 = vpop.eup %1282  ;;  %957 = vst [vmem:[%s1499_s9 + $0x60] sm:$0xff] %v941_v13  ;;  %v944_v4 = vsel %vm1487_vm3, %v1281_v12, %v1503_v25 }
 0x2dc   : > { %960 = vst [vmem:[%s1499_s9 + $0x78] sm:$0xff] %v944_v4  ;;  %v942_v7 = vsel %vm1487_vm3, %v1283_v14, %v1507_v32 }
 0x2dd   : > { %958 = vst [vmem:[%s1499_s9 + $0x68] sm:$0xff] %v942_v7 }
 0x2de PF: > { %s17_s24 = sadd.s32 1, %s1290_s24  }
 0x2df   : > { %p14_p4 = scmp.ge.s32.totalorder %s17_s24, 4  }
 0x2e1   :  { %16 = sbr.rel (!%p14_p4) target bundleno = 1 (0x1), region = 78 }

</bundles_post_ra>
